<compile_context>
chip_gen: v7x
topology: tpu7x:2x2x1
jax: 0.10.0
libtpu: 0.0.40
codegen_flags: <defaults>
</compile_context>

<pallas_src>
import math
import numpy as np
import jax
import jax.numpy as jnp
from jax.experimental import pallas as pl
from jax.experimental.pallas import tpu as pltpu

LOG_PROBS_PRECISION = -1.0e5  # stand-in for get_log_probs_precision()


# ---------------------------------------------------------------------------
# Parameter init (glue, plain JAX) — mirrors MarkovTransition.init_diag_transitions
# + normalize_transitions, deterministically.
# ---------------------------------------------------------------------------
def init_diag_transitions(n_states, diag_rate=0.95, log_probs_precision=LOG_PROBS_PRECISION):
    S = n_states
    off_diag_rate = (1.0 - diag_rate) / (S - 2.0)
    eye = jnp.eye(S, dtype=jnp.float32)
    trans = diag_rate * eye + off_diag_rate * (jnp.ones((S, S), jnp.float32) - eye)
    trans = trans.at[0, 0].set(jnp.exp(jnp.float32(log_probs_precision)))
    trans = trans.at[0, 1:].set(1.0 / (S - 1.0))
    log_trans = jnp.log(trans)
    # normalize_transitions
    log_trans = log_trans.at[:, 0].set(log_probs_precision)
    log_trans = log_trans.at[0, :].set(log_probs_precision)
    log_trans = jax.nn.log_softmax(log_trans, axis=1)
    log_trans = log_trans.at[0, 0].set(log_probs_precision)
    log_trans = log_trans.at[0, 1:].set(
        jnp.log((1.0 - np.exp(log_probs_precision)) / (S - 1.0))
    )
    return log_trans.astype(jnp.float32)


# ---------------------------------------------------------------------------
# Pallas kernel: lane-dense broadcast-add.
#   lvp_ref    : (tile_p, R*S)       packed log_vs rows
#   expand_ref : (R*S, R*S*S)        one-hot expansion matrix (grid-invariant)
#   lsm_ref    : (1, R*S*S)          tiled, flattened log_softmax(log_trans)
#   out_ref    : (tile_p, R*S*S)     lane-dense output block
# ---------------------------------------------------------------------------
def markov_transition_kernel(lvp_ref, expand_ref, lsm_ref, out_ref):
    # One-hot matmul expands each log_vs entry across its S-wide output stripe.
    # HIGHEST precision => exact-to-f32 reconstruction (weights are 0/1).
    expanded = jnp.dot(
        lvp_ref[...], expand_ref[...],
        preferred_element_type=jnp.float32,
        precision=jax.lax.Precision.HIGHEST,
    )
    # Single whole-tile broadcast-add (VPU is the only real consumer).
    out_ref[...] = expanded + lsm_ref[...]


def _round_up(x, m):
    return ((x + m - 1) // m) * m


def markov_transition_forward(log_vs, log_trans, *, tile_rows=4096):
    """log_vs: (B, T, S) float32, log_trans: (S, S) float32 -> (B, T, S, S)."""
    B, T, S = log_vs.shape
    N = B * T

    # Grid-invariant row log-softmax, hoisted out of the kernel loop.
    log_sm = jax.nn.log_softmax(log_trans.astype(jnp.float32), axis=1)   # (S, S)

    # Pack R consecutive batch rows so the flattened output row width R*S*S is a
    # multiple of 128 lanes (unmasked, lane-dense stores).  S=8 -> R=2, W=128.
    per_row = S * S
    R = max(1, 128 // math.gcd(per_row, 128))
    if R > 16:            # pathological S; fall back (still correct, just less dense)
        R = 1
    W = R * per_row       # flattened output row width
    RS = R * S            # packed log_vs row width

    # One-hot expansion matrix E[i, i*S + j] = 1.
    expand = jnp.asarray(
        np.kron(np.eye(RS, dtype=np.float32), np.ones((1, S), dtype=np.float32))
    )                                                           # (RS, W)
    lsm_row = jnp.tile(log_sm.reshape(1, per_row), (1, R))      # (1, W)

    # Tile / padding bookkeeping (in packed rows).
    n_pack = pl.cdiv(N, R)
    tile_p = min(_round_up(max(1, tile_rows // R), 8), _round_up(n_pack, 8))
    np_pad = _round_up(n_pack, tile_p)
    n_pad = np_pad * R

    log_vs_flat = log_vs.reshape(N, S).astype(jnp.float32)
    if n_pad > N:
        log_vs_flat = jnp.concatenate(
            [log_vs_flat, jnp.zeros((n_pad - N, S), jnp.float32)], axis=0
        )
    lvp = log_vs_flat.reshape(np_pad, RS)

    out_packed = pl.pallas_call(
        markov_transition_kernel,
        out_shape=jax.ShapeDtypeStruct((np_pad, W), jnp.float32),
        grid_spec=pltpu.PrefetchScalarGridSpec(
            num_scalar_prefetch=0,
            grid=(np_pad // tile_p,),
            in_specs=[
                pl.BlockSpec((tile_p, RS), lambda i: (i, 0)),
                pl.BlockSpec((RS, W), lambda i: (0, 0)),   # grid-invariant constant
                pl.BlockSpec((1, W), lambda i: (0, 0)),    # grid-invariant constant
            ],
            out_specs=pl.BlockSpec((tile_p, W), lambda i: (i, 0)),
        ),
        compiler_params=pltpu.CompilerParams(
            dimension_semantics=("parallel",),
        ),
    )(lvp, expand, lsm_row)

    # Free layout plumbing: (np_pad, R*S*S) -> (n_pad, S, S) -> slice -> (B,T,S,S).
    out = out_packed.reshape(n_pad, S, S)[:N]
    return out.reshape(B, T, S, S)


if __name__ == "__main__":
    # Module constructed with n_states=7  ->  internal S = 1 + 7 = 8 states.
    n_states_arg = 7
    S = 1 + n_states_arg
    B, T = 2, 8

    log_trans = init_diag_transitions(S, diag_rate=0.95)

    key = jax.random.PRNGKey(0)
    # log_vs: log-values over the S states (e.g. forward-algorithm messages).
    log_vs = jax.nn.log_softmax(
        jax.random.normal(key, (B, T, S), dtype=jnp.float32), axis=-1
    )

    out = markov_transition_forward(log_vs, log_trans)
    out = jax.block_until_ready(out)

    # Reference check against plain JAX semantics of the PyTorch forward.
    ref = log_vs[..., :, None] + jax.nn.log_softmax(log_trans, axis=1)[None, None, :, :]
    np.testing.assert_allclose(np.asarray(out), np.asarray(ref), rtol=1e-5, atol=1e-5)

    print("KERNEL_OK")
</pallas_src>

<mosaic_0001>
module attributes {stable_mosaic.version = 11 : i64} {
  func.func @markov_transition_kernel(%arg0: i32, %arg1: memref<8x16xf32, #tpu.memory_space<vmem>>, %arg2: memref<16x128xf32, #tpu.memory_space<vmem>>, %arg3: memref<1x128xf32, #tpu.memory_space<vmem>>, %arg4: memref<8x128xf32, #tpu.memory_space<vmem>>) attributes {dimension_semantics = [#tpu.dimension_semantics<parallel>], iteration_bounds = array<i64: 1>, scalar_prefetch = 0 : i64, scratch_operands = 0 : i64, tpu.core_type = #tpu.core_type<tc>, window_params = [{transform_indices = @transform_0, window_bounds = array<i64: 8, 16>}, {pipeline_mode = #tpu.pipeline_mode<synchronous>, transform_indices = @transform_1, window_bounds = array<i64: 16, 128>}, {pipeline_mode = #tpu.pipeline_mode<synchronous>, transform_indices = @transform_2, window_bounds = array<i64: 1, 128>}, {transform_indices = @transform_3, window_bounds = array<i64: 8, 128>}]} {
    %c0 = arith.constant 0 : index
    %c0_0 = arith.constant 0 : index
    %0 = vector.load %arg1[%c0, %c0_0] : memref<8x16xf32, #tpu.memory_space<vmem>>, vector<8x16xf32>
    %c0_1 = arith.constant 0 : index
    %c0_2 = arith.constant 0 : index
    %1 = vector.load %arg2[%c0_1, %c0_2] : memref<16x128xf32, #tpu.memory_space<vmem>>, vector<16x128xf32>
    %cst = arith.constant dense<0.000000e+00> : vector<8x128xf32>
    %2 = tpu.matmul %0, %1, %cst {dimension_numbers = #tpu.dot_dimension_numbers<[1], [0], [0], [1], [0, 0, 1, 1], [], []>, precision = #tpu.contract_precision<fp32>} : vector<8x16xf32>, vector<16x128xf32>, vector<8x128xf32> -> vector<8x128xf32>
    %c0_3 = arith.constant 0 : index
    %c0_4 = arith.constant 0 : index
    %3 = vector.load %arg3[%c0_3, %c0_4] : memref<1x128xf32, #tpu.memory_space<vmem>>, vector<1x128xf32>
    %4 = vector.broadcast %3 : vector<1x128xf32> to vector<8x128xf32>
    %5 = arith.addf %2, %4 : vector<8x128xf32>
    %c0_5 = arith.constant 0 : index
    %c0_6 = arith.constant 0 : index
    %6 = vector.load %arg4[%c0_5, %c0_6] : memref<8x128xf32, #tpu.memory_space<vmem>>, vector<8x128xf32>
    tpu.vector_store %arg4[%c0_5, %c0_6], %5 {strides = array<i32>} : memref<8x128xf32, #tpu.memory_space<vmem>>, vector<8x128xf32>,
    return
  }
  func.func @transform_0(%arg0: i32) -> (i32, i32) {
    %c0_i32 = arith.constant 0 : i32
    %c0_i32_0 = arith.constant 0 : i32
    return %arg0, %c0_i32 : i32, i32
  }
  func.func @transform_1(%arg0: i32) -> (i32, i32) {
    %c0_i32 = arith.constant 0 : i32
    %c0_i32_0 = arith.constant 0 : i32
    %c0_i32_1 = arith.constant 0 : i32
    return %c0_i32, %c0_i32_0 : i32, i32
  }
  func.func @transform_2(%arg0: i32) -> (i32, i32) {
    %c0_i32 = arith.constant 0 : i32
    %c0_i32_0 = arith.constant 0 : i32
    %c0_i32_1 = arith.constant 0 : i32
    return %c0_i32, %c0_i32_0 : i32, i32
  }
  func.func @transform_3(%arg0: i32) -> (i32, i32) {
    %c0_i32 = arith.constant 0 : i32
    %c0_i32_0 = arith.constant 0 : i32
    return %arg0, %c0_i32 : i32, i32
  }
}

</mosaic_0001>

<bundles_post_ra>
// kernel: tpu_custom_call.1
= control target key start
LH: loop header
LB: loop body
LE: loop exit
PB: predicated region body
PF: predicated region fallthrough
CT: control target
= control target key end

     0   :  { %8 = vsyncpa [#allocation3], 0  ;;  %s780_s0 = inlined_call_operand.hbm [shape: f32[8,16], index: 0, kind: input, shape index: {}]   ;;  %s781_s1 = inlined_call_operand.hbm [shape: f32[16,128], index: 1, kind: input, shape index: {}]   ;;  %s782_s2 = inlined_call_operand.vmem [shape: f32[1,128], index: 2, kind: input, shape index: {}]   ;;  %s783_s3 = inlined_call_operand.hbm [shape: f32[8,128], index: 3, kind: output, shape index: {}]  }
   0x1   :  { %9 = vsyncpa [#allocation6], 0 }
   0x2   :  { %10 = vsyncpa [#allocation4], 0  ;;  %s700_s12 = smov [#allocation2]   ;;  %s701_s14 = smov [#allocation5]  }
   0x3   :  { %s17_s13 = sshll.u32 %s700_s12, 4  ;;  %s26_s15 = sshll.u32 %s701_s14, 4  ;;  %s18_s13 = int_to_ptr.vmem [resolvable:$true] %s17_s13  ;;  %s728_s15 = int_to_ptr.vmem [resolvable:$true] %s26_s15 }
   0x4   :  { %s628_s18 = scalar_lea.hbm %s780_s0, 128 }
   0x5   :  { %p629_p0 = scmp.ne.s32.totalorder %s780_s0, %s628_s18  ;;  %p632_p1 = scmp.lt.u32.totalorder %s628_s18, %s780_s0 }
   0x7   :  { %p634_p2 = pnand %p632_p1, %p629_p0 }
   0x9   :  { %637 = shalt.err (!%p634_p2)
}
   0xa   :  { %s638_s23 = scalar_lea.vmem %s18_s13, 128  ;;  %p643_p4 = scmp.lt.s32.totalorder %s18_s13, %s18_s13 }
   0xb   :  { %p639_p3 = scmp.ne.s32.totalorder %s18_s13, %s638_s23  ;;  %p644_p5 = scmp.lt.s32.totalorder %s638_s23, %s638_s23 }
   0xd   :  { %p645_p6 = por %p644_p5, %p643_p4 }
   0xf   :  { %p646_p7 = pnand %p645_p6, %p639_p3 }
  0x11   :  { %649 = shalt.err (!%p646_p7)
}
  0x12   :  { %20 = dma.hbm_to_vmem [thread:$0]  %s780_s0, 128, %s18_s13, [#allocation3]  }
  0x13   :  { %s650_s28 = scalar_lea.hbm %s781_s1, 256 }
  0x14   :  { %p651_p8 = scmp.ne.s32.totalorder %s781_s1, %s650_s28  ;;  %p654_p9 = scmp.lt.u32.totalorder %s650_s28, %s781_s1 }
  0x16   :  { %p656_p10 = pnand %p654_p9, %p651_p8 }
  0x18   :  { %659 = shalt.err (!%p656_p10)
}
  0x19   :  { %s660_s6 = scalar_lea.vmem %s728_s15, 256  ;;  %p665_p12 = scmp.lt.s32.totalorder %s728_s15, %s728_s15 }
  0x1a   :  { %p661_p11 = scmp.ne.s32.totalorder %s728_s15, %s660_s6  ;;  %p666_p13 = scmp.lt.s32.totalorder %s660_s6, %s660_s6 }
  0x1c   :  { %p667_p0 = por %p666_p13, %p665_p12 }
  0x1e   :  { %p668_p1 = pnand %p667_p0, %p661_p11 }
  0x20   :  { %671 = shalt.err (!%p668_p1)
}
  0x21   :  { %s702_s0 = smov 128   ;;  %s703_s7 = smov 8  }
  0x22   :  { %32 = dma.hbm_to_vmem [thread:$0]  %s781_s1, 256, %s728_s15, [#allocation6], %s702_s0, %s702_s0, %s703_s7  }
  0x23   :  { %694 = dma.done.wait [#allocation3], 128  }
  0x24   :  { %695 = vsyncadd [#allocation3], 4294967168 }
  0x25   :  { %696 = dma.done.wait [#allocation6], 256  }
  0x26   :  { %697 = vsyncadd [#allocation6], 4294967040  ;;  %v704_v0 = vmov 0.0|0.0   ;;  %vm705_vm0 = vmmov 0   ;;  %v706_v1 = vmov 0.0   ;;  %vm51_vm1 = vcmask 130048  }
  0x27   :  { %601 = vmatprep.subr.bf16.mxu0 %v704_v0  ;;  %575 = vmatprep.mubr.msk.f32.mxu0 %vm705_vm0, %v706_v1  ;;  %v42_v2 = vld [vmem:[#allocation5] sm:$0xff]  ;;  %v43_v3 = vld [vmem:[#allocation5 + $0x8] sm:$0xff]  ;;  %v41_v4 = vld [vmem:[#allocation2] sm:$0xff]  ;;  %s707_s11 = smov [#allocation7]  }
  0x28   :  { %592 = vmatprep.subr.bf16.mxu1 %v704_v0  ;;  %554 = vmatprep.mubr.msk.f32.mxu1 %vm705_vm0, %v706_v1  ;;  %v56_v5 = vand.u32 4294901760, %v42_v2  ;;  %v59_v6 = vand.u32 4294901760, %v43_v3  ;;  %v53_v7 = vsel %vm51_vm1, %v41_v4, 0  ;;  %v531_v27 = vld [vmem:[%s782_s2] ss:$0 sm:$0xff]  ;;  %s521_s12 = sshll.u32 %s707_s11, 4  ;;  %s522_s12 = int_to_ptr.vmem [resolvable:$true] %s521_s12 }
  0x29   :  { %v122_v8 = vand.u32 4294901760, %v53_v7  ;;  %s672_s13 = scalar_lea.vmem %s522_s12, 128  ;;  %p677_p3 = scmp.lt.s32.totalorder %s522_s12, %s522_s12 }
  0x2a   :  { %v593_v9 = vpack.c.bf16 %v59_v6, %v56_v5  ;;  %v134_v10 = vsub.f32 %v42_v2, %v56_v5  ;;  %v141_v11 = vsub.f32 %v43_v3, %v59_v6  ;;  %p673_p2 = scmp.ne.s32.totalorder %s522_s12, %s672_s13  ;;  %p678_p4 = scmp.lt.s32.totalorder %s672_s13, %s672_s13 }
  0x2b   :  { %v123_v12 = vsub.f32 %v53_v7, %v122_v8 }
  0x2c   :  { %603 = vmatpush3.bf16.msra.mxu0 %v593_v9  ;;  %594 = vmatpush3.bf16.msra.mxu1 %v593_v9  ;;  %v135_v13 = vand.u32 4294901760, %v134_v10  ;;  %v142_v14 = vand.u32 4294901760, %v141_v11  ;;  %v599_v24 = vpack.c.bf16 %v141_v11, %v134_v10  ;;  %p679_p5 = por %p678_p4, %p677_p3 }
  0x2d   :  { %v124_v15 = vand.u32 4294901760, %v123_v12  ;;  %595 = vmatprep.subr.bf16.mxu1 %v704_v0  ;;  %604 = vmatprep.subr.bf16.mxu0 %v704_v0 }
  0x2e   :  { %v136_v16 = vsub.f32 %v134_v10, %v135_v13  ;;  %v143_v17 = vsub.f32 %v141_v11, %v142_v14  ;;  %v605_v18 = vpack.c.bf16 %v142_v14, %v135_v13  ;;  %p680_p6 = pnand %p679_p5, %p673_p2 }
  0x2f   :  { %576 = vmatmul.mubr.f32.vlgmr.msra.gmra.mrb[0].mxu0 %v124_v15  ;;  %v125_v19 = vsub.f32 %v123_v12, %v124_v15 }
  0x30   :  { %v137_v20 = vand.u32 4294901760, %v136_v16  ;;  %v144_v21 = vand.u32 4294901760, %v143_v17  ;;  %606 = vmatpush3.bf16.msra.mxu0 %v605_v18  ;;  %582 = vmatprep.mubr.msk.f32.mxu0 %vm705_vm0, %v706_v1 }
  0x31   :  { %v126_v22 = vand.u32 4294901760, %v125_v19  ;;  %607 = vmatprep.subr.bf16.mxu0 %v704_v0 }
  0x32   :  { %v596_v23 = vpack.c.bf16 %v144_v21, %v137_v20 }
  0x33   :  { %555 = vmatmul.mubr.f32.vlgmr.msra.gmra.mrb[0].mxu1 %v126_v22 }
  0x34   :  { %597 = vmatpush3.bf16.msra.mxu1 %v596_v23  ;;  %561 = vmatprep.mubr.msk.f32.mxu1 %vm705_vm0, %v706_v1 }
  0x35   :  { %598 = vmatprep.subr.bf16.mxu1 %v704_v0 }
  0x37   :  { %583 = vmatmul.mubr.f32.vlgmr.msra.gmra.mrb[0].mxu0 %v122_v8 }
  0x38   :  { %609 = vmatpush3.bf16.msra.mxu0 %v593_v9  ;;  %589 = vmatprep.mubr.msk.f32.mxu0 %vm705_vm0, %v706_v1 }
  0x3b   :  { %562 = vmatmul.mubr.f32.vlgmr.msra.gmra.mrb[0].mxu1 %v122_v8 }
  0x3c   :  { %600 = vmatpush3.bf16.msra.mxu1 %v599_v24  ;;  %568 = vmatprep.mubr.msk.f32.mxu1 %vm705_vm0, %v706_v1 }
  0x3f   :  { %590 = vmatmul.mubr.f32.vlgmr.msra.gmra.mrb[0].mxu0 %v122_v8 }
  0x43   :  { %569 = vmatmul.mubr.f32.vlgmr.msra.gmra.mrb[0].mxu1 %v123_v12 }
 0x112   :  { %v510_v25 = vpop.f32.mrb[0].mxu0 }
 0x113   :  { %v591_v26 = vpop.f32.mrb[1].mxu0 }
 0x116   :  { %v285_v28 = vpop.f32.mrb[0].mxu1 }
 0x117   :  { %v610_v29 = vadd.f32 %v531_v27, %v285_v28  ;;  %v570_v30 = vpop.f32.mrb[1].mxu1 }
 0x119   :  { %v611_v31 = vadd.f32 %v610_v29, %v510_v25 }
 0x11b   :  { %514 = vst [vmem:[#allocation7] sm:$0xff] %v611_v31 }
 0x11c   :  { %683 = shalt.err (!%p680_p6)
}
 0x11d   :  { %s684_s16 = scalar_lea.hbm %s783_s3, 128 }
 0x11e   :  { %p685_p7 = scmp.ne.s32.totalorder %s783_s3, %s684_s16  ;;  %p688_p8 = scmp.lt.u32.totalorder %s684_s16, %s783_s3 }
 0x120   :  { %p690_p9 = pnand %p688_p8, %p685_p7 }
 0x122   :  { %693 = shalt.err (!%p690_p9)
}
 0x123   :  { %524 = dma.vmem_to_hbm [thread:$0]  %s522_s12, 128, %s783_s3, [#allocation4]  }
 0x124   :  { %698 = dma.done.wait [#allocation4], 128  }
 0x125   :  { %699 = vsyncadd [#allocation4], 4294967168 }
 0x126   :  { %528 = vsyncpa [#allocation3], 1 }
 0x127   :  { %529 = vsyncpa [#allocation6], 1 }
 0x128   :  { %530 = vsyncpa [#allocation4], 1 }

</bundles_post_ra>
